<compile_context>
chip_gen: v7x
topology: tpu7x:2x2x1
jax: 0.10.0
libtpu: 0.0.40
codegen_flags: <defaults>
</compile_context>

<pallas_src>
import functools

import jax
import jax.numpy as jnp
from jax.experimental import pallas as pl
from jax.experimental.pallas import tpu as pltpu


def _round_up(x, n):
    return (x + n - 1) // n * n


def _choose_row_tile(m, target=2048):
    """Big row tile (multiple of 8). If more than one grid step is needed,
    use an even number of steps so v7x's two TensorCores stay balanced."""
    m8 = _round_up(max(m, 1), 8)
    if m8 <= target:
        return m8                       # single step: minimal per-step overhead
    steps = pl.cdiv(m8, target)
    steps = _round_up(steps, 2)         # even split across 2 TCs on v7x
    return _round_up(pl.cdiv(m8, steps), 8)


def _mlp_kernel(n_hidden, compute_dtype, x_ref, *refs):
    """refs = (w_first?, w_mid?, b_hidden?, w_last, b_last, out_ref).

    w_first : (env_dim, h_pad)            first hidden weight (lane-padded, bf16/f32)
    w_mid   : (n_hidden-1, h_pad, h_pad)  remaining hidden weights (zero-padded)
    b_hidden: (n_hidden, h_pad)           hidden biases, f32
    w_last  : (h_pad or env_dim, out_dim) final projection weight
    b_last  : (1, out_dim)                final bias, f32
    Matmul operands are compute_dtype; accumulation/bias/ReLU are f32; the
    inter-layer activation is carried in compute_dtype.
    """
    *hidden_refs, w_last_ref, b_last_ref, out_ref = refs

    h = x_ref[...].astype(compute_dtype)

    if n_hidden > 0:
        if n_hidden > 1:
            w_first_ref, w_mid_ref, b_hidden_ref = hidden_refs
        else:
            w_first_ref, b_hidden_ref = hidden_refs
            w_mid_ref = None

        a = jnp.dot(h, w_first_ref[...], preferred_element_type=jnp.float32)
        a = jnp.maximum(a + b_hidden_ref[pl.ds(0, 1), :], 0.0)
        h = a.astype(compute_dtype)

        for layer in range(1, n_hidden):
            a = jnp.dot(h, w_mid_ref[layer - 1],
                        preferred_element_type=jnp.float32)
            a = jnp.maximum(a + b_hidden_ref[pl.ds(layer, 1), :], 0.0)
            h = a.astype(compute_dtype)

    out = jnp.dot(h, w_last_ref[...], preferred_element_type=jnp.float32)
    out_ref[...] = (out + b_last_ref[...]).astype(out_ref.dtype)


def prepare_params(params, compute_dtype=jnp.bfloat16):
    """One-time fuse/pad/cast of the ffn parameters into kernel operands.

    Call this once and reuse the result across forward calls (per the perf
    review: hoists the per-call padding/casting out of the hot path).
    """
    if params is None:
        return None
    n_layers = len(params)
    n_hidden = n_layers - 1
    env_dim = params[0][0].shape[0]
    out_dim = params[-1][0].shape[1]

    operands = []
    if n_hidden > 0:
        hid = params[0][0].shape[1]
        h_pad = _round_up(hid, 128)     # lane-dense hidden width
        w0, b0 = params[0]
        w_first = (jnp.zeros((env_dim, h_pad), compute_dtype)
                   .at[:, :hid].set(w0.astype(compute_dtype)))
        b_hidden = (jnp.zeros((n_hidden, h_pad), jnp.float32)
                    .at[0, :hid].set(b0.astype(jnp.float32)))
        operands.append(w_first)
        if n_hidden > 1:
            w_mid = jnp.zeros((n_hidden - 1, h_pad, h_pad), compute_dtype)
            for layer in range(1, n_hidden):
                w, b = params[layer]
                w_mid = w_mid.at[layer - 1, :w.shape[0], :w.shape[1]].set(
                    w.astype(compute_dtype))
                b_hidden = b_hidden.at[layer, :b.shape[0]].set(
                    b.astype(jnp.float32))
            operands.append(w_mid)
        operands.append(b_hidden)
        last_in = h_pad
    else:
        last_in = env_dim

    w_l, b_l = params[-1]
    w_last = (jnp.zeros((last_in, out_dim), compute_dtype)
              .at[:w_l.shape[0], :].set(w_l.astype(compute_dtype)))
    b_last = b_l.astype(jnp.float32).reshape(1, out_dim)
    operands += [w_last, b_last]

    return {
        "n_hidden": n_hidden,
        "env_dim": env_dim,
        "out_dim": out_dim,
        "compute_dtype": compute_dtype,
        "operands": tuple(operands),
    }


def feature_encoder_forward(env_features, prepared, *, row_tile=None):
    """Pallas implementation of FeatureEncoder.forward.

    Args:
      env_features: (batch, num_context_pt, env_dim) float array.
      prepared: result of prepare_params(params, ...) or None for the
                ffn-is-None identity path.
      row_tile: rows of the flattened (M, env_dim) slab per grid step
                (auto-chosen if None).
    Returns:
      (batch, num_context_pt, env_embed_dim) float32 array (or the input
      itself if prepared is None).
    """
    if prepared is None:            # ffn is None -> identity
        return env_features

    batch, num_ctx, env_dim = env_features.shape
    assert env_dim == prepared["env_dim"]
    n_hidden = prepared["n_hidden"]
    out_dim = prepared["out_dim"]
    compute_dtype = prepared["compute_dtype"]
    operands = prepared["operands"]

    m = batch * num_ctx
    if row_tile is None:
        row_tile = _choose_row_tile(m)
    else:
        row_tile = _round_up(row_tile, 8)
    grid = (pl.cdiv(m, row_tile),)      # no wrapper pad: edge block is masked

    # Keep the input dtype as-is; the kernel casts to compute_dtype.
    x2d = env_features.reshape(m, env_dim)

    in_specs = [pl.BlockSpec((row_tile, env_dim), lambda i: (i, 0))]
    for op in operands:                 # grid-invariant weight/bias operands
        if op.ndim == 2:
            in_specs.append(pl.BlockSpec(op.shape, lambda i: (0, 0)))
        else:
            in_specs.append(pl.BlockSpec(op.shape, lambda i: (0, 0, 0)))

    out_spec = pl.BlockSpec((row_tile, out_dim), lambda i: (i, 0))
    kernel = functools.partial(_mlp_kernel, n_hidden, compute_dtype)

    out2d = pl.pallas_call(
        kernel,
        out_shape=jax.ShapeDtypeStruct((m, out_dim), jnp.float32),
        grid_spec=pltpu.PrefetchScalarGridSpec(
            num_scalar_prefetch=0,
            grid=grid,
            in_specs=in_specs,
            out_specs=out_spec,
        ),
        compiler_params=pltpu.CompilerParams(
            dimension_semantics=("parallel",)),
    )(x2d, *operands)

    return out2d.reshape(batch, num_ctx, out_dim)


def init_params(key, env_dim, env_embed_dim, nn_length, nn_hidden_dim):
    """Deterministic parameter init mirroring the module's layer structure."""
    dims = [env_dim] + [nn_hidden_dim] * nn_length + [env_embed_dim]
    params = []
    for d_in, d_out in zip(dims[:-1], dims[1:]):
        key, kw, kb = jax.random.split(key, 3)
        scale = 1.0 / jnp.sqrt(jnp.float32(d_in))
        w = jax.random.uniform(kw, (d_in, d_out), jnp.float32, -scale, scale)
        b = jax.random.uniform(kb, (d_out,), jnp.float32, -scale, scale)
        params.append((w, b))
    return params


def reference_forward(env_features, params):
    """Plain-JAX reference of the same MLP (for the correctness check)."""
    if params is None:
        return env_features
    h = env_features.astype(jnp.float32)
    n = len(params)
    for i, (w, b) in enumerate(params):
        h = h @ w + b
        if i != n - 1:
            h = jnp.maximum(h, 0.0)
    return h


if __name__ == "__main__":
    # Settings consistent with the module's __init__.
    env_dim = 11          # feature_dim / input_embed_dim
    env_embed_dim = 32
    settings = {"nn_length": 2, "nn_hidden_dim": 32, "dropout_rate": 0.5}

    key = jax.random.PRNGKey(0)
    key, kx, kx2 = jax.random.split(key, 3)
    params = init_params(
        key, env_dim, env_embed_dim,
        settings["nn_length"], settings["nn_hidden_dim"],
    )

    # One-time parameter prep (cached across calls).
    prep_bf16 = prepare_params(params)                         # bf16 default
    prep_f32 = prepare_params(params, compute_dtype=jnp.float32)

    # --- small canonical shape ---
    batch, num_context_pt = 2, 8
    env_features = jax.random.normal(
        kx, (batch, num_context_pt, env_dim), jnp.float32)
    ref = reference_forward(env_features, params)

    # f32 MXU-operand path, tight tolerance.
    out_f32 = jax.block_until_ready(
        feature_encoder_forward(env_features, prep_f32))
    assert out_f32.shape == (batch, num_context_pt, env_embed_dim)
    assert jnp.allclose(out_f32, ref, atol=1e-5, rtol=1e-5)

    # bf16 MXU-operand path (default, v6e/v7x friendly), looser tolerance.
    out_bf16 = jax.block_until_ready(
        feature_encoder_forward(env_features, prep_bf16))
    assert out_bf16.shape == (batch, num_context_pt, env_embed_dim)
    assert jnp.allclose(out_bf16, ref, atol=5e-2, rtol=5e-2)

    # --- awkward row count (multi-step grid + masked edge block) ---
    batch2, num_ctx2 = 3, 37   # m = 111, not a multiple of the tile
    env_features2 = jax.random.normal(
        kx2, (batch2, num_ctx2, env_dim), jnp.float32)
    out2 = jax.block_until_ready(
        feature_encoder_forward(env_features2, prep_f32, row_tile=32))
    ref2 = reference_forward(env_features2, params)
    assert out2.shape == (batch2, num_ctx2, env_embed_dim)
    assert jnp.allclose(out2, ref2, atol=1e-5, rtol=1e-5)

    # --- ffn is None -> identity path ---
    ident = feature_encoder_forward(env_features, None)
    assert jnp.array_equal(ident, env_features)

    print("KERNEL_OK")
</pallas_src>

<mosaic_0001>
module attributes {stable_mosaic.version = 11 : i64} {
  func.func @_mlp_kernel(%arg0: i32, %arg1: memref<16x11xf32, #tpu.memory_space<vmem>>, %arg2: memref<11x128xf32, #tpu.memory_space<vmem>>, %arg3: memref<1x128x128xf32, #tpu.memory_space<vmem>>, %arg4: memref<2x128xf32, #tpu.memory_space<vmem>>, %arg5: memref<128x32xf32, #tpu.memory_space<vmem>>, %arg6: memref<1x32xf32, #tpu.memory_space<vmem>>, %arg7: memref<16x32xf32, #tpu.memory_space<vmem>>) attributes {dimension_semantics = [#tpu.dimension_semantics<parallel>], iteration_bounds = array<i64: 1>, scalar_prefetch = 0 : i64, scratch_operands = 0 : i64, tpu.core_type = #tpu.core_type<tc>, window_params = [{transform_indices = @transform_0, window_bounds = array<i64: 16, 11>}, {pipeline_mode = #tpu.pipeline_mode<synchronous>, transform_indices = @transform_1, window_bounds = array<i64: 11, 128>}, {pipeline_mode = #tpu.pipeline_mode<synchronous>, transform_indices = @transform_2, window_bounds = array<i64: 1, 128, 128>}, {pipeline_mode = #tpu.pipeline_mode<synchronous>, transform_indices = @transform_3, window_bounds = array<i64: 2, 128>}, {pipeline_mode = #tpu.pipeline_mode<synchronous>, transform_indices = @transform_4, window_bounds = array<i64: 128, 32>}, {pipeline_mode = #tpu.pipeline_mode<synchronous>, transform_indices = @transform_5, window_bounds = array<i64: 1, 32>}, {transform_indices = @transform_6, window_bounds = array<i64: 16, 32>}]} {
    %c0 = arith.constant 0 : index
    %c0_0 = arith.constant 0 : index
    %0 = vector.load %arg1[%c0, %c0_0] : memref<16x11xf32, #tpu.memory_space<vmem>>, vector<16x11xf32>
    %c0_1 = arith.constant 0 : index
    %c0_2 = arith.constant 0 : index
    %1 = vector.load %arg2[%c0_1, %c0_2] : memref<11x128xf32, #tpu.memory_space<vmem>>, vector<11x128xf32>
    %cst = arith.constant dense<0.000000e+00> : vector<16x128xf32>
    %2 = tpu.matmul %0, %1, %cst {dimension_numbers = #tpu.dot_dimension_numbers<[1], [0], [0], [1], [0, 0, 1, 1], [], []>} : vector<16x11xf32>, vector<11x128xf32>, vector<16x128xf32> -> vector<16x128xf32>
    %c0_3 = arith.constant 0 : index
    %c0_4 = arith.constant 0 : index
    %3 = vector.load %arg4[%c0_3, %c0_4] : memref<2x128xf32, #tpu.memory_space<vmem>>, vector<1x128xf32>
    %4 = vector.broadcast %3 : vector<1x128xf32> to vector<16x128xf32>
    %5 = arith.addf %2, %4 : vector<16x128xf32>
    %cst_5 = arith.constant 0.000000e+00 : f32
    %6 = vector.broadcast %cst_5 : f32 to vector<16x128xf32>
    %7 = arith.maximumf %5, %6 : vector<16x128xf32>
    %c0_6 = arith.constant 0 : index
    %c0_7 = arith.constant 0 : index
    %c0_8 = arith.constant 0 : index
    %8 = vector.load %arg3[%c0_6, %c0_7, %c0_8] : memref<1x128x128xf32, #tpu.memory_space<vmem>>, vector<1x128x128xf32>
    %9 = vector.shape_cast %8 : vector<1x128x128xf32> to vector<128x128xf32>
    %cst_9 = arith.constant dense<0.000000e+00> : vector<16x128xf32>
    %10 = tpu.matmul %7, %9, %cst_9 {dimension_numbers = #tpu.dot_dimension_numbers<[1], [0], [0], [1], [0, 0, 1, 1], [], []>} : vector<16x128xf32>, vector<128x128xf32>, vector<16x128xf32> -> vector<16x128xf32>
    %c1 = arith.constant 1 : index
    %c0_10 = arith.constant 0 : index
    %11 = vector.load %arg4[%c1, %c0_10] : memref<2x128xf32, #tpu.memory_space<vmem>>, vector<1x128xf32>
    %12 = vector.broadcast %11 : vector<1x128xf32> to vector<16x128xf32>
    %13 = arith.addf %10, %12 : vector<16x128xf32>
    %cst_11 = arith.constant 0.000000e+00 : f32
    %14 = vector.broadcast %cst_11 : f32 to vector<16x128xf32>
    %15 = arith.maximumf %13, %14 : vector<16x128xf32>
    %c0_12 = arith.constant 0 : index
    %c0_13 = arith.constant 0 : index
    %16 = vector.load %arg5[%c0_12, %c0_13] : memref<128x32xf32, #tpu.memory_space<vmem>>, vector<128x32xf32>
    %cst_14 = arith.constant dense<0.000000e+00> : vector<16x32xf32>
    %17 = tpu.matmul %15, %16, %cst_14 {dimension_numbers = #tpu.dot_dimension_numbers<[1], [0], [0], [1], [0, 0, 1, 1], [], []>} : vector<16x128xf32>, vector<128x32xf32>, vector<16x32xf32> -> vector<16x32xf32>
    %c0_15 = arith.constant 0 : index
    %c0_16 = arith.constant 0 : index
    %18 = vector.load %arg6[%c0_15, %c0_16] : memref<1x32xf32, #tpu.memory_space<vmem>>, vector<1x32xf32>
    %19 = vector.broadcast %18 : vector<1x32xf32> to vector<16x32xf32>
    %20 = arith.addf %17, %19 : vector<16x32xf32>
    %c0_17 = arith.constant 0 : index
    %c0_18 = arith.constant 0 : index
    %21 = vector.load %arg7[%c0_17, %c0_18] : memref<16x32xf32, #tpu.memory_space<vmem>>, vector<16x32xf32>
    tpu.vector_store %arg7[%c0_17, %c0_18], %20 {strides = array<i32>} : memref<16x32xf32, #tpu.memory_space<vmem>>, vector<16x32xf32>,
    return
  }
  func.func @transform_0(%arg0: i32) -> (i32, i32) {
    %c0_i32 = arith.constant 0 : i32
    %c0_i32_0 = arith.constant 0 : i32
    return %arg0, %c0_i32 : i32, i32
  }
  func.func @transform_1(%arg0: i32) -> (i32, i32) {
    %c0_i32 = arith.constant 0 : i32
    %c0_i32_0 = arith.constant 0 : i32
    %c0_i32_1 = arith.constant 0 : i32
    return %c0_i32, %c0_i32_0 : i32, i32
  }
  func.func @transform_2(%arg0: i32) -> (i32, i32, i32) {
    %c0_i32 = arith.constant 0 : i32
    %c0_i32_0 = arith.constant 0 : i32
    %c0_i32_1 = arith.constant 0 : i32
    %c0_i32_2 = arith.constant 0 : i32
    return %c0_i32, %c0_i32_0, %c0_i32_1 : i32, i32, i32
  }
  func.func @transform_3(%arg0: i32) -> (i32, i32) {
    %c0_i32 = arith.constant 0 : i32
    %c0_i32_0 = arith.constant 0 : i32
    %c0_i32_1 = arith.constant 0 : i32
    return %c0_i32, %c0_i32_0 : i32, i32
  }
  func.func @transform_4(%arg0: i32) -> (i32, i32) {
    %c0_i32 = arith.constant 0 : i32
    %c0_i32_0 = arith.constant 0 : i32
    %c0_i32_1 = arith.constant 0 : i32
    return %c0_i32, %c0_i32_0 : i32, i32
  }
  func.func @transform_5(%arg0: i32) -> (i32, i32) {
    %c0_i32 = arith.constant 0 : i32
    %c0_i32_0 = arith.constant 0 : i32
    %c0_i32_1 = arith.constant 0 : i32
    return %c0_i32, %c0_i32_0 : i32, i32
  }
  func.func @transform_6(%arg0: i32) -> (i32, i32) {
    %c0_i32 = arith.constant 0 : i32
    %c0_i32_0 = arith.constant 0 : i32
    return %arg0, %c0_i32 : i32, i32
  }
}

</mosaic_0001>

<bundles_post_ra>
// kernel: tpu_custom_call.1
= control target key start
LH: loop header
LB: loop body
LE: loop exit
PB: predicated region body
PF: predicated region fallthrough
CT: control target
= control target key end

     0   :  { %vm40_vm0 = vcmask 1042432   ;;  %vm557_vm1 = vmmov 1   ;;  %vm33_vm3 = vcmask 89088   ;;  %s727_s0 = inlined_call_operand.vmem [shape: f32[16,11], index: 0, kind: input, shape index: {}]   ;;  %s728_s1 = inlined_call_operand.vmem [shape: f32[11,128], index: 1, kind: input, shape index: {}]   ;;  %s729_s2 = inlined_call_operand.vmem [shape: f32[1,128,128], index: 2, kind: input, shape index: {}]   ;;  %s730_s3 = inlined_call_operand.vmem [shape: f32[2,128], index: 3, kind: input, shape index: {}]   ;;  %s731_s4 = inlined_call_operand.vmem [shape: f32[128,32], index: 4, kind: input, shape index: {}]   ;;  %s732_s5 = inlined_call_operand.vmem [shape: f32[1,32], index: 5, kind: input, shape index: {}]   ;;  %s733_s6 = inlined_call_operand.hbm [shape: f32[16,32], index: 6, kind: output, shape index: {}]  }
   0x1   :  { %v26_v0 = vld [vmem:[%s728_s1] sm:$0xff]  ;;  %v27_v1 = vld [vmem:[%s728_s1 + $0x8] sm:$0x7]  ;;  %vm460_vm2 = vmpackc.low %vm40_vm0, %vm557_vm1 }
   0x2   :  { %v24_v2 = vld [vmem:[%s727_s0] sm:$0xff]  ;;  %v459_v3 = vpack.c.bf16 %v27_v1, %v26_v0  ;;  %v122_v5 = vld [vmem:[%s729_s2 + $0x8] sm:$0xff]  ;;  %v123_v6 = vld [vmem:[%s729_s2 + $0x10] sm:$0xff] }
   0x3   :  { %v121_v4 = vld [vmem:[%s729_s2] sm:$0xff]  ;;  %386 = vmatprep.mubr.msk.f32.mxu0 %vm33_vm3, %v24_v2  ;;  %v124_v7 = vld [vmem:[%s729_s2 + $0x18] sm:$0xff]  ;;  %v25_v10 = vld [vmem:[%s727_s0 + $0x8] sm:$0xff] }
   0x4   :  { %461 = vmatprep.subr.msk.bf16.mxu0 %vm460_vm2, %v459_v3  ;;  %v465_v8 = vpack.c.bf16 %v122_v5, %v121_v4  ;;  %v469_v9 = vpack.c.bf16 %v124_v7, %v123_v6  ;;  %v125_v11 = vld [vmem:[%s729_s2 + $0x20] sm:$0xff]  ;;  %v126_v12 = vld [vmem:[%s729_s2 + $0x28] sm:$0xff] }
   0x5   :  { %464 = vmatpush3.bf16.msk.msra.mxu0 %vm460_vm2, %v459_v3 }
   0x6   :  { %466 = vmatprep.subr.bf16.mxu1 %v465_v8 }
   0x7   :  { %468 = vmatpush3.bf16.msra.mxu1 %v465_v8 }
   0x8   :  { %11 = vsyncpa [#allocation3], 0  ;;  %387 = vmatmul.mubr.msk.f32.vlgmr.msra.gmra.mrb[0].mxu0 %vm33_vm3, %v25_v10  ;;  %470 = vmatprep.subr.bf16.mxu1 %v469_v9  ;;  %v473_v13 = vpack.c.bf16 %v126_v12, %v125_v11  ;;  %v127_v14 = vld [vmem:[%s729_s2 + $0x30] sm:$0xff]  ;;  %v128_v15 = vld [vmem:[%s729_s2 + $0x38] sm:$0xff]  ;;  %vm317_vm4 = vcmask 261120  }
   0x9   :  { %v477_v16 = vpack.c.bf16 %v128_v15, %v127_v14  ;;  %v129_v17 = vld [vmem:[%s729_s2 + $0x40] sm:$0xff]  ;;  %v130_v18 = vld [vmem:[%s729_s2 + $0x48] sm:$0xff]  ;;  %v131_v20 = vld [vmem:[%s729_s2 + $0x50] sm:$0xff] }
   0xa   :  { %v481_v19 = vpack.c.bf16 %v130_v18, %v129_v17  ;;  %v132_v21 = vld [vmem:[%s729_s2 + $0x58] sm:$0xff]  ;;  %v133_v23 = vld [vmem:[%s729_s2 + $0x60] sm:$0xff]  ;;  %v134_v24 = vld [vmem:[%s729_s2 + $0x68] sm:$0xff] }
   0xb   :  { %472 = vmatpush3.bf16.msra.mxu1 %v469_v9  ;;  %v485_v22 = vpack.c.bf16 %v132_v21, %v131_v20  ;;  %v489_v25 = vpack.c.bf16 %v134_v24, %v133_v23  ;;  %v135_v26 = vld [vmem:[%s729_s2 + $0x70] sm:$0xff]  ;;  %v136_v27 = vld [vmem:[%s729_s2 + $0x78] sm:$0xff]  ;;  %v219_v29 = vld [vmem:[%s731_s4] sm:$0xff] }
   0xc   :  { %474 = vmatprep.subr.bf16.mxu1 %v473_v13  ;;  %v493_v28 = vpack.c.bf16 %v136_v27, %v135_v26  ;;  %v220_v30 = vld [vmem:[%s731_s4 + $0x8] sm:$0xff]  ;;  %v221_v31 = vld [vmem:[%s731_s4 + $0x10] sm:$0xff]  ;;  %v222_v33 = vld [vmem:[%s731_s4 + $0x18] sm:$0xff] }
   0xd   :  { %v497_v32 = vpack.c.bf16 %v220_v30, %v219_v29  ;;  %v501_v34 = vpack.c.bf16 %v222_v33, %v221_v31  ;;  %v223_v35 = vld [vmem:[%s731_s4 + $0x20] sm:$0xff]  ;;  %v224_v36 = vld [vmem:[%s731_s4 + $0x28] sm:$0xff]  ;;  %v225_v38 = vld [vmem:[%s731_s4 + $0x30] sm:$0xff] }
   0xe   :  { %v505_v37 = vpack.c.bf16 %v224_v36, %v223_v35  ;;  %v226_v39 = vld [vmem:[%s731_s4 + $0x38] sm:$0xff]  ;;  %v227_v41 = vld [vmem:[%s731_s4 + $0x40] sm:$0xff]  ;;  %v228_v42 = vld [vmem:[%s731_s4 + $0x48] sm:$0xff] }
   0xf   :  { %476 = vmatpush3.bf16.msra.mxu1 %v473_v13  ;;  %498 = vmatprep.subr.bf16.mxu0 %v497_v32  ;;  %v509_v40 = vpack.c.bf16 %v226_v39, %v225_v38  ;;  %v513_v43 = vpack.c.bf16 %v228_v42, %v227_v41  ;;  %v229_v44 = vld [vmem:[%s731_s4 + $0x50] sm:$0xff]  ;;  %v230_v45 = vld [vmem:[%s731_s4 + $0x58] sm:$0xff]  ;;  %v231_v47 = vld [vmem:[%s731_s4 + $0x60] sm:$0xff] }
  0x10   :  { %478 = vmatprep.subr.bf16.mxu1 %v477_v16  ;;  %500 = vmatpush3.bf16.msra.mxu0 %v497_v32  ;;  %v517_v46 = vpack.c.bf16 %v230_v45, %v229_v44  ;;  %v232_v48 = vld [vmem:[%s731_s4 + $0x68] sm:$0xff]  ;;  %v336_v50 = vld [vmem:[%s730_s3] ss:$0 sm:$0xff]  ;;  %v233_v57 = vld [vmem:[%s731_s4 + $0x70] sm:$0xff] }
  0x11   :  { %502 = vmatprep.subr.bf16.mxu0 %v501_v34  ;;  %v521_v49 = vpack.c.bf16 %v232_v48, %v231_v47  ;;  %v234_v58 = vld [vmem:[%s731_s4 + $0x78] sm:$0xff]  ;;  %v340_v60 = vld [vmem:[%s730_s3 + $0x1] ss:$0 sm:$0xff]  ;;  %v341_v3 = vld [vmem:[%s732_s5] ss:$0 sm:$0xff]  ;;  %s558_s4 = smov [#allocation2]  }
  0x12   :  { %v525_v59 = vpack.c.bf16 %v234_v58, %v233_v57  ;;  %s325_s19 = sshll.u32 %s558_s4, 4  ;;  %s326_s19 = int_to_ptr.vmem [resolvable:$true] %s325_s19 }
  0x13   :  { %480 = vmatpush3.bf16.msra.mxu1 %v477_v16  ;;  %s533_s3 = scalar_lea.vmem %s326_s19, 256  ;;  %p538_p1 = scmp.lt.s32.totalorder %s326_s19, %s326_s19 }
  0x14   :  { %482 = vmatprep.subr.bf16.mxu1 %v481_v19  ;;  %504 = vmatpush3.bf16.msra.mxu0 %v501_v34  ;;  %p534_p0 = scmp.ne.s32.totalorder %s326_s19, %s533_s3  ;;  %p539_p2 = scmp.lt.s32.totalorder %s533_s3, %s533_s3 }
  0x15   :  { %506 = vmatprep.subr.bf16.mxu0 %v505_v37 }
  0x16   :  { %p540_p3 = por %p539_p2, %p538_p1 }
  0x17   :  { %484 = vmatpush3.bf16.msra.mxu1 %v481_v19 }
  0x18   :  { %486 = vmatprep.subr.bf16.mxu1 %v485_v22  ;;  %508 = vmatpush3.bf16.msra.mxu0 %v505_v37  ;;  %p541_p4 = pnand %p540_p3, %p534_p0 }
  0x19   :  { %510 = vmatprep.subr.bf16.mxu0 %v509_v40 }
  0x1b   :  { %488 = vmatpush3.bf16.msra.mxu1 %v485_v22 }
  0x1c   :  { %490 = vmatprep.subr.bf16.mxu1 %v489_v25  ;;  %512 = vmatpush3.bf16.msra.mxu0 %v509_v40 }
  0x1d   :  { %514 = vmatprep.subr.bf16.mxu0 %v513_v43 }
  0x1f   :  { %492 = vmatpush3.bf16.msra.mxu1 %v489_v25 }
  0x20   :  { %494 = vmatprep.subr.bf16.mxu1 %v493_v28  ;;  %516 = vmatpush3.bf16.msra.mxu0 %v513_v43 }
  0x21   :  { %518 = vmatprep.subr.bf16.mxu0 %v517_v46 }
  0x23   :  { %496 = vmatpush3.bf16.msra.mxu1 %v493_v28 }
  0x24   :  { %520 = vmatpush3.bf16.msra.mxu0 %v517_v46 }
  0x25   :  { %522 = vmatprep.subr.bf16.mxu0 %v521_v49 }
  0x28   :  { %524 = vmatpush3.bf16.msra.mxu0 %v521_v49 }
  0x29   :  { %526 = vmatprep.subr.bf16.mxu0 %v525_v59 }
  0x2c   :  { %528 = vmatpush3.bf16.msra.mxu0 %v525_v59 }
  0xdb   :  { %v388_v51 = vpop.f32.mrb[0].mxu0 }
  0xdc   :  { %v116_v52 = vadd.f32 %v388_v51, %v336_v50  ;;  %v110_v53 = vpop.f32.mrb[1].mxu0 }
  0xdd   :  { %v111_v54 = vadd.f32 %v336_v50, %v110_v53 }
  0xde   :  { %v120_v56 = vmax.f32 %v116_v52, 0.0 }
  0xdf   :  { %v119_v55 = vmax.f32 %v111_v54, 0.0 }
  0xe1   :  { %421 = vmatprep.mubr.f32.mxu1 %v119_v55 }
  0xe2   :  { %422 = vmatmul.mubr.f32.vlgmr.msra.gmra.mrb[0].mxu1 %v120_v56 }
 0x1b5   :  { %v423_v61 = vpop.f32.mrb[0].mxu1 }
 0x1b6   :  { %v214_v62 = vadd.f32 %v423_v61, %v340_v60  ;;  %v208_v63 = vpop.f32.mrb[1].mxu1 }
 0x1b7   :  { %v209_v0 = vadd.f32 %v340_v60, %v208_v63 }
 0x1b8   :  { %v218_v2 = vmax.f32 %v214_v62, 0.0 }
 0x1b9   :  { %v217_v1 = vmax.f32 %v209_v0, 0.0 }
 0x1bb   :  { %456 = vmatprep.mubr.f32.mxu0 %v217_v1 }
 0x1bc   :  { %457 = vmatmul.mubr.f32.vlgmr.msra.gmra.mrb[2].mxu0 %v218_v2 }
 0x28f   :  { %v458_v4 = vpop.f32.mrb[2].mxu0 }
 0x290   :  { %v314_v5 = vadd.f32 %v458_v4, %v341_v3  ;;  %v308_v6 = vpop.f32.mrb[3].mxu0 }
 0x291   :  { %v309_v7 = vadd.f32 %v341_v3, %v308_v6 }
 0x292   :  { %319 = vst.msk [vmem:[#allocation2 + $0x8] sm:$0xff] %vm317_vm4, %v314_v5 }
 0x293   :  { %318 = vst.msk [vmem:[#allocation2] sm:$0xff] %vm317_vm4, %v309_v7 }
 0x294   :  { %544 = shalt.err (!%p541_p4)
}
 0x295   :  { %s545_s5 = scalar_lea.hbm %s733_s6, 256 }
 0x296   :  { %p546_p5 = scmp.ne.s32.totalorder %s733_s6, %s545_s5  ;;  %p549_p6 = scmp.lt.u32.totalorder %s545_s5, %s733_s6 }
 0x298   :  { %p551_p7 = pnand %p549_p6, %p546_p5 }
 0x29a   :  { %554 = shalt.err (!%p551_p7)
}
 0x29b   :  { %s559_s26 = smov 128   ;;  %s560_s27 = smov 8  }
 0x29c   :  { %331 = dma.vmem_to_hbm [thread:$0]  %s326_s19, 256, %s733_s6, [#allocation3], %s559_s26, %s559_s26, %s560_s27  }
 0x29d   :  { %555 = dma.done.wait [#allocation3], 256  }
 0x29e   :  { %556 = vsyncadd [#allocation3], 4294967040 }
 0x29f   :  { %335 = vsyncpa [#allocation3], 1 }

</bundles_post_ra>
